<compile_context>
chip_gen: v7x
topology: tpu7x:2x2x1
jax: 0.10.0
libtpu: 0.0.40
codegen_flags: <defaults>
</compile_context>

<pallas_src>
import functools

import jax
import jax.numpy as jnp
from jax.experimental import pallas as pl
from jax.experimental.pallas import tpu as pltpu


def _round_up(x, m):
    return (x + m - 1) // m * m


def _spatial_gather_kernel(p_ref, f_ref, o_ref, attn_t_ref, *, scale):
    # p_ref:      (1, Kp, HW)  probs slab for this batch (block idx constant over c)
    # f_ref:      (1, tc, HW)  feats channel tile, native NCHW layout
    # o_ref:      (1, tc, Kp)  output tile, (channels, classes) layout
    # attn_t_ref: (HW, Kp)     VMEM scratch: TRANSPOSED softmax, reused over c tiles

    # Softmax + transpose of the SMALL operand, once per batch (c axis innermost).
    @pl.when(pl.program_id(1) == 0)
    def _():
        p = p_ref[0].astype(jnp.float32)                  # (Kp, HW)
        if scale != 1.0:                                  # static branch
            p = p * scale
        m = jnp.max(p, axis=-1, keepdims=True)            # stable softmax
        e = jnp.exp(p - m)
        denom = jnp.sum(e, axis=-1, keepdims=True)
        attn = e * pl.reciprocal(denom, approx=False)     # (Kp, HW), f32
        # Transpose the small attention matrix once per batch so the per-tile
        # matmul below is a plain NN contraction (big feats tile never relaid).
        attn_t_ref[...] = jnp.transpose(attn).astype(attn_t_ref.dtype)  # (HW, Kp)

    # (tc, HW) @ (HW, Kp) -> (tc, Kp); f32 accumulation on the MXU.
    o_ref[0] = jnp.dot(
        f_ref[0], attn_t_ref[...], preferred_element_type=jnp.float32
    ).astype(o_ref.dtype)


def _vmem_capacity_bytes():
    try:
        info = pltpu.get_tpu_info()
        cap = getattr(info, "vmem_capacity_bytes", None)
        if cap:
            return int(cap)
    except Exception:
        pass
    return 64 * 1024 * 1024  # conservative (v7x-sized) fallback


def _pick_channel_tile(C, HW, itemsize, pair_budget_bytes):
    """Largest lane-friendly channel tile whose double-buffered feats pair fits."""
    hw_pad = _round_up(HW, 128)

    def fits(tc):
        return 2 * _round_up(tc, 8) * hw_pad * itemsize <= pair_budget_bytes

    # Lane-dense (multiple of 128) tiles that divide C, largest first.
    m128 = [tc for tc in range(128, min(C, 4096) + 1, 128) if C % tc == 0]
    for tc in sorted(m128, reverse=True):
        if fits(tc):
            return tc
    # Full-extent channel block (legal for any C, incl. C < 8).
    if fits(C):
        return C
    # Sublane-aligned divisors of C.
    m8 = [tc for tc in range(8, C, 8) if C % tc == 0]
    for tc in sorted(m8, reverse=True):
        if fits(tc):
            return tc
    # Last resort (may exceed budget / need an edge-masked tile).
    # TODO(synk): add an HW reduction grid axis instead of over-provisioning here.
    if m128:
        return m128[0]
    if m8:
        return m8[0]
    return C


def spatial_gather(feats, probs, scale=1.0):
    """feats: (B, C, H, W), probs: (B, K, H, W)  ->  (B, C, K, 1)."""
    B, C, H, W = feats.shape
    K = probs.shape[1]
    HW = H * W

    f = feats.reshape(B, C, HW)          # NCHW kept -- feats make exactly one HBM pass
    p = probs.reshape(B, K, HW)

    # Pad classes to a multiple of 8 sublanes (keeps the f32 softmax/transpose
    # aligned).  Padded rows become uniform softmax rows and are sliced off.
    Kp = _round_up(max(K, 1), 8)
    if Kp != K:
        p = jnp.pad(p, ((0, 0), (0, Kp - K), (0, 0)))

    f_itemsize = jnp.dtype(feats.dtype).itemsize
    p_itemsize = jnp.dtype(p.dtype).itemsize
    # attn_t in the feats dtype so bf16 feats run the MXU at bf16 rate (f32 acc).
    # NOTE: bf16 attn quantizes softmax weights -> compare bf16 runs with a
    # looser tolerance than the f32 reference.
    attn_dtype = jnp.bfloat16 if feats.dtype == jnp.bfloat16 else jnp.float32
    attn_itemsize = jnp.dtype(attn_dtype).itemsize

    cap = _vmem_capacity_bytes()
    hw_pad = _round_up(HW, 128)
    kp_lane = _round_up(Kp, 128)

    # Non-feats VMEM residents: probs double-buffer + attn_t scratch + output pair.
    fixed = (2 * Kp * hw_pad * p_itemsize
             + _round_up(HW, 8) * kp_lane * attn_itemsize
             + 2 * 2048 * kp_lane * f_itemsize)
    # Feats double-buffer budget scales with chip VMEM: ~64 MiB on v5e/v6e
    # (128 MiB VMEM), ~24-28 MiB on v7x (64 MiB VMEM).
    pair_budget = max(min(cap // 2, cap - fixed - (8 << 20)), 4 << 20)

    tc = _pick_channel_tile(C, HW, f_itemsize, pair_budget)
    n_c = pl.cdiv(C, tc)

    est = (2 * Kp * hw_pad * p_itemsize
           + 2 * _round_up(tc, 8) * hw_pad * f_itemsize
           + _round_up(HW, 8) * kp_lane * attn_itemsize
           + 2 * _round_up(tc, 8) * kp_lane * f_itemsize)
    # Never clamp below the estimate; never above the chip's physical VMEM.
    vmem_limit = int(min(cap, max(est + (8 << 20), 32 * 1024 * 1024)))

    cost = pl.CostEstimate(
        flops=int(2 * B * C * Kp * HW + 6 * B * Kp * HW),
        transcendentals=int(B * Kp * HW),
        bytes_accessed=int(B * Kp * HW * p_itemsize
                           + B * C * HW * f_itemsize
                           + B * C * Kp * f_itemsize),
    )

    kernel = functools.partial(_spatial_gather_kernel, scale=float(scale))

    out = pl.pallas_call(
        kernel,
        out_shape=jax.ShapeDtypeStruct((B, C, Kp), feats.dtype),
        grid=(B, n_c),
        in_specs=[
            # probs: block index constant over c -> DMA issued once per batch.
            pl.BlockSpec((1, Kp, HW), lambda b, c: (b, 0, 0)),
            # feats: channel tile of the native NCHW slab.
            pl.BlockSpec((1, tc, HW), lambda b, c: (b, c, 0)),
        ],
        out_specs=pl.BlockSpec((1, tc, Kp), lambda b, c: (b, c, 0)),
        scratch_shapes=[pltpu.VMEM((HW, Kp), attn_dtype)],
        compiler_params=pltpu.CompilerParams(
            dimension_semantics=("parallel", "arbitrary"),
            vmem_limit_bytes=vmem_limit,
        ),
        cost_estimate=cost,
    )(p, f)

    if Kp != K:
        out = out[:, :, :K]                    # drop padded classes
    return out[..., None]                      # (B, C, K, 1)


def _reference(feats, probs, scale=1.0):
    B, C, H, W = feats.shape
    K = probs.shape[1]
    p = probs.reshape(B, K, -1).astype(jnp.float32)
    f = jnp.transpose(feats.reshape(B, C, -1), (0, 2, 1)).astype(jnp.float32)
    p = jax.nn.softmax(scale * p, axis=2)
    ctx = jnp.einsum("bkn,bnc->bkc", p, f)
    return jnp.transpose(ctx, (0, 2, 1))[..., None].astype(feats.dtype)


if __name__ == "__main__":
    key = jax.random.PRNGKey(0)
    kf, kp = jax.random.split(key)

    B, C, H, W = 2, 4, 16, 16     # feature map (B, C, H, W)
    K = 8                         # number of classes in `probs`
    scale = 1.0                   # SpatialGather_Module(scale=1)

    feats = jax.random.normal(kf, (B, C, H, W), dtype=jnp.float32)
    probs = jax.random.normal(kp, (B, K, H, W), dtype=jnp.float32)

    out = spatial_gather(feats, probs, scale=scale)
    out = jax.block_until_ready(out)

    ref = _reference(feats, probs, scale=scale)
    assert out.shape == (B, C, K, 1), out.shape
    assert jnp.allclose(out, ref, atol=1e-5, rtol=1e-5), "mismatch vs reference"

    print("KERNEL_OK")
</pallas_src>

<mosaic_0001>
module attributes {stable_mosaic.version = 11 : i64} {
  func.func @_spatial_gather_kernel(%arg0: i32, %arg1: i32, %arg2: memref<1x8x256xf32, #tpu.memory_space<vmem>>, %arg3: memref<1x4x256xf32, #tpu.memory_space<vmem>>, %arg4: memref<1x4x8xf32, #tpu.memory_space<vmem>>, %arg5: memref<256x8xf32, #tpu.memory_space<vmem>>) attributes {dimension_semantics = [#tpu.dimension_semantics<parallel>, #tpu.dimension_semantics<arbitrary>], iteration_bounds = array<i64: 2, 1>, scalar_prefetch = 0 : i64, scratch_operands = 1 : i64, tpu.core_type = #tpu.core_type<tc>, window_params = [{transform_indices = @transform_0, window_bounds = array<i64: 1, 8, 256>}, {transform_indices = @transform_1, window_bounds = array<i64: 1, 4, 256>}, {transform_indices = @transform_2, window_bounds = array<i64: 1, 4, 8>}]} {
    %c0_i32 = arith.constant 0 : i32
    %0 = arith.cmpi eq, %arg1, %c0_i32 : i32
    %1 = arith.extui %0 : i1 to i32
    %c0_i32_0 = arith.constant 0 : i32
    %2 = arith.cmpi ne, %1, %c0_i32_0 : i32
    scf.if %2 {
      %c0_8 = arith.constant 0 : index
      %c0_9 = arith.constant 0 : index
      %c0_10 = arith.constant 0 : index
      %10 = vector.load %arg2[%c0_8, %c0_9, %c0_10] : memref<1x8x256xf32, #tpu.memory_space<vmem>>, vector<1x8x256xf32>
      %11 = vector.shape_cast %10 : vector<1x8x256xf32> to vector<8x256xf32>
      %cst_11 = arith.constant dense<0xFF800000> : vector<8xf32>
      %12 = vector.multi_reduction <maximumf>, %11, %cst_11 [1] : vector<8x256xf32> to vector<8xf32>
      %13 = vector.shape_cast %12 : vector<8xf32> to vector<8x1xf32>
      %14 = vector.broadcast %13 : vector<8x1xf32> to vector<8x256xf32>
      %15 = arith.subf %11, %14 : vector<8x256xf32>
      %16 = math.exp %15 : vector<8x256xf32>
      %cst_12 = arith.constant dense<0.000000e+00> : vector<8xf32>
      %17 = vector.multi_reduction <add>, %16, %cst_12 [1] : vector<8x256xf32> to vector<8xf32>
      %18 = vector.shape_cast %17 : vector<8xf32> to vector<8x1xf32>
      %19 = tpu.reciprocal %18 : vector<8x1xf32> -> vector<8x1xf32>
      %20 = vector.broadcast %19 : vector<8x1xf32> to vector<8x256xf32>
      %21 = arith.mulf %16, %20 : vector<8x256xf32>
      %22 = tpu.transpose %21, [1, 0] : vector<8x256xf32> -> vector<256x8xf32>
      %c0_13 = arith.constant 0 : index
      %c0_14 = arith.constant 0 : index
      %23 = vector.load %arg5[%c0_13, %c0_14] : memref<256x8xf32, #tpu.memory_space<vmem>>, vector<256x8xf32>
      tpu.vector_store %arg5[%c0_13, %c0_14], %22 {strides = array<i32>} : memref<256x8xf32, #tpu.memory_space<vmem>>, vector<256x8xf32>,
    } else {
    }
    %c0 = arith.constant 0 : index
    %c0_1 = arith.constant 0 : index
    %c0_2 = arith.constant 0 : index
    %3 = vector.load %arg3[%c0, %c0_1, %c0_2] : memref<1x4x256xf32, #tpu.memory_space<vmem>>, vector<1x4x256xf32>
    %4 = vector.shape_cast %3 : vector<1x4x256xf32> to vector<4x256xf32>
    %c0_3 = arith.constant 0 : index
    %c0_4 = arith.constant 0 : index
    %5 = vector.load %arg5[%c0_3, %c0_4] : memref<256x8xf32, #tpu.memory_space<vmem>>, vector<256x8xf32>
    %cst = arith.constant dense<0.000000e+00> : vector<4x8xf32>
    %6 = tpu.matmul %4, %5, %cst {dimension_numbers = #tpu.dot_dimension_numbers<[1], [0], [0], [1], [0, 0, 1, 1], [], []>} : vector<4x256xf32>, vector<256x8xf32>, vector<4x8xf32> -> vector<4x8xf32>
    %c0_5 = arith.constant 0 : index
    %c0_6 = arith.constant 0 : index
    %c0_7 = arith.constant 0 : index
    %7 = vector.load %arg4[%c0_5, %c0_6, %c0_7] : memref<1x4x8xf32, #tpu.memory_space<vmem>>, vector<1x4x8xf32>
    %8 = vector.shape_cast %7 : vector<1x4x8xf32> to vector<4x8xf32>
    %9 = vector.shape_cast %6 : vector<4x8xf32> to vector<1x4x8xf32>
    tpu.vector_store %arg4[%c0_5, %c0_6, %c0_7], %9 {strides = array<i32>} : memref<1x4x8xf32, #tpu.memory_space<vmem>>, vector<1x4x8xf32>,
    return
  }
  func.func @transform_0(%arg0: i32, %arg1: i32) -> (i32, i32, i32) {
    %c0_i32 = arith.constant 0 : i32
    %c0_i32_0 = arith.constant 0 : i32
    %c0_i32_1 = arith.constant 0 : i32
    return %arg0, %c0_i32, %c0_i32_0 : i32, i32, i32
  }
  func.func @transform_1(%arg0: i32, %arg1: i32) -> (i32, i32, i32) {
    %c0_i32 = arith.constant 0 : i32
    %c0_i32_0 = arith.constant 0 : i32
    return %arg0, %arg1, %c0_i32 : i32, i32, i32
  }
  func.func @transform_2(%arg0: i32, %arg1: i32) -> (i32, i32, i32) {
    %c0_i32 = arith.constant 0 : i32
    %c0_i32_0 = arith.constant 0 : i32
    return %arg0, %arg1, %c0_i32 : i32, i32, i32
  }
}

</mosaic_0001>

<bundles_post_ra>
// kernel: tpu_custom_call.1
= control target key start
LH: loop header
LB: loop body
LE: loop exit
PB: predicated region body
PF: predicated region fallthrough
CT: control target
= control target key end

     0   :  { %7 = vsyncpa [#allocation4], 0  ;;  %s1143_s0 = inlined_call_operand.hbm [shape: f32[2,8,256], index: 0, kind: input, shape index: {}]   ;;  %s1144_s1 = inlined_call_operand.hbm [shape: f32[2,4,256], index: 1, kind: input, shape index: {}]   ;;  %s1145_s2 = inlined_call_operand.hbm [shape: f32[2,4,8], index: 2, kind: output, shape index: {}]  }
   0x1   :  { %9 = vsyncpa [#allocation4 + $0x1], 0 }
   0x2   :  { %10 = vsyncpa [#allocation7], 0 }
   0x3   :  { %12 = vsyncpa [#allocation7 + $0x1], 0 }
   0x4   :  { %13 = vsyncpa [#allocation5], 0 }
   0x5   :  { %15 = vsyncpa [#allocation5 + $0x1], 0  ;;  %s890_s9 = smov 0   ;;  %s892_s10 = smov 0  }
   0x6   :  { %s894_s11 = smov 0   ;;  %s896_s12 = smov 0  }
   0x7   :  { %s898_s13 = smov 0   ;;  %s900_s14 = smov 0  }
   0x8 LB: > { %s562_s15 = sadd.s32 4294967295, %s870_s14   ;;  %s563_s16 = sadd.s32 4294967294, %s870_s14   ;;  %s870_s14 = sphi %s900_s14, %s21_s14   ;;  %s866_s13 = sphi %s898_s13, %s1165_s13   ;;  %s862_s12 = sphi %s896_s12, %s1164_s12   ;;  %s858_s11 = sphi %s894_s11, %s1163_s11   ;;  %s854_s10 = sphi %s892_s10, %s1162_s10   ;;  %s850_s9 = sphi %s890_s9, %s1161_s9  }
   0x9   : > { %s33_s17 = sadd.s32 1, %s866_s13  ;;  %s40_s18 = sadd.s32 1, %s858_s11 }
   0xa   : > { %p35_p0 = scmp.ge.s32.totalorder %s33_s17, 2  ;;  %p47_p1 = scmp.ne.s32.totalorder %s858_s11, %s854_s10 }
   0xb   : > { %p48_p2 = scmp.eq.s32.totalorder %s870_s14, 0  ;;  %p53_p3 = scmp.ne.s32.totalorder %s854_s10, %s850_s9 }
   0xc   : > { %s1167_s17 = smov (%p35_p0, %s33_s17), 0  ;;  %p54_p5 = scmp.eq.s32.totalorder %s562_s15, 0 }
   0xd   : > { %p931_p4 = por %p48_p2, %p47_p1  ;;  %s37_s20 = ssub.s32 %s866_s13, %s1167_s17 }
   0xe   : > { %p107_p6 = scmp.eq.s32.totalorder %s562_s15, 1  ;;  %p38_p7 = scmp.eq.s32.totalorder %s37_s20, 0 }
   0xf   : > { %p937_p8 = por %p54_p5, %p53_p3  ;;  %p113_p10 = scmp.eq.s32.totalorder %s563_s16, 1 }
  0x10   : > { %p941_p9 = por %p107_p6, %p47_p1  ;;  %p666_p13 = scmp.lt.s32.totalorder %s870_s14, 2 }
  0x11   : > { %s1149_s21 = scalar_select %p937_p8, 1, 0 }
  0x12   : > { %s1150_s22 = scalar_select %p941_p9, 1, 0 }
  0x13   : > { %s946_s23 = scalar_select %p38_p7, %s858_s11, %s40_s18  }
  0x14   : > { %p948_p11 = por %p113_p10, %p53_p3  ;;  %s955_s25 = sand.u32 1, %s858_s11  }
  0x15   : > { %s566_s26 = sshll.u32 %s955_s25, 4  ;;  %s580_s27 = sshll.u32 %s866_s13, 8 }
  0x16   : > { %s1151_s24 = scalar_select %p948_p11, 1, 0 }
  0x17   : > { %s962_s30 = scalar_lea.hbm %s1143_s0, %s580_s27  ;;  %s137_s3 = scalar_lea.vmem [#allocation3], %s566_s26 }
  0x18   : > { %s145_s4 = sshll.u32 %s137_s3, 4  ;;  %p968_p0 = pnand %p666_p13, %p931_p4  ;;  %s964_s4 = int_to_ptr.vmem [resolvable:$true] %s145_s4 }
  0x19   : > { %s134_s6 = scalar_lea.sflag [#allocation4], %s955_s25  ;;  %s724_s7 = scalar_lea.hbm %s962_s30, 256 }
  0x1a   : > { %p725_p3 = scmp.ne.s32.totalorder %s962_s30, %s724_s7  ;;  %p726_p5 = pneg %p968_p0 }
  0x1b   : > { %s729_s16 = scalar_lea.hbm %s1143_s0, 512  ;;  %p730_p4 = scmp.lt.u32.totalorder %s962_s30, %s1143_s0 }
  0x1c   : > { %p727_p6 = pnand %p726_p5, %p725_p3  ;;  %p731_p10 = scmp.lt.u32.totalorder %s729_s16, %s724_s7 }
  0x1d   : > { %p733_p12 = scmp.lt.u32.totalorder %s724_s7, %s962_s30 }
  0x1e   : > { %p728_p7 = pneg %p727_p6  ;;  %p732_p13 = por %p731_p10, %p730_p4 }
  0x20   : > { %p734_p1 = por %p733_p12, %p732_p13 }
  0x22   : > { %p735_p2 = pnand %p734_p1, %p728_p7 }
  0x24   : > { %738 = shalt.err (!%p735_p2)
}
  0x25   : > { %s739_s20 = scalar_lea.vmem %s964_s4, 256  ;;  %s872_s26 = smov [#allocation3]  }
  0x26   : > { %p740_p3 = scmp.ne.s32.totalorder %s964_s4, %s739_s20  ;;  %s744_s27 = sshll.u32 %s872_s26, 4  ;;  %s745_s27 = int_to_ptr.vmem [resolvable:$false] %s744_s27 }
  0x27   : > { %s746_s28 = scalar_lea.vmem %s745_s27, 512  ;;  %p747_p9 = scmp.lt.s32.totalorder %s964_s4, %s745_s27 }
  0x28   : > { %p742_p6 = pnand %p740_p3, %p726_p5  ;;  %p748_p4 = scmp.lt.s32.totalorder %s746_s28, %s739_s20 }
  0x2a   : > { %p743_p11 = pneg %p742_p6  ;;  %p749_p10 = por %p748_p4, %p747_p9 }
  0x2c   : > { %p750_p12 = pnand %p749_p10, %p743_p11 }
  0x2e   : > { %753 = shalt.err (!%p750_p12)
}
  0x2f   : > { %658 = dma.hbm_to_vmem [thread:$0]  (!%p968_p0), %s962_s30, 256, %s964_s4, %s134_s6  }
  0x30   : > { %p1153_p1 = scmp.lt.s32.totalorder %s870_s14, 3  ;;  %p1154_p2 = scmp.ge.s32.totalorder %s870_s14, 1 }
  0x31   : > { %s569_s3 = sshll.u32 %s955_s25, 3  ;;  %s581_s7 = sshll.u32 %s866_s13, 7 }
  0x32   : > { %p1004_p7 = pnand %p1154_p2, %p1153_p1  ;;  %s1013_s16 = scalar_lea.hbm %s1144_s1, %s581_s7 }
  0x33   : > { %s156_s18 = scalar_lea.vmem [#allocation6], %s569_s3  ;;  %s153_s30 = scalar_lea.sflag [#allocation7], %s955_s25 }
  0x34   : > { %s1155_s29 = scalar_select %p1004_p7, 1, 0 }
  0x35   : > { %s166_s19 = sshll.u32 %s156_s18, 4  ;;  %s754_s4 = scalar_lea.hbm %s1013_s16, 128  ;;  %s167_s19 = int_to_ptr.vmem [resolvable:$true] %s166_s19 }
  0x36   : > { %p755_p9 = scmp.ne.s32.totalorder %s1013_s16, %s754_s4  ;;  %s759_s26 = scalar_lea.hbm %s1144_s1, 256 }
  0x37   : > { %p760_p3 = scmp.lt.u32.totalorder %s1013_s16, %s1144_s1  ;;  %p761_p6 = scmp.lt.u32.totalorder %s759_s26, %s754_s4 }
  0x38   : > { %p757_p11 = pnand %p755_p9, %p726_p5  ;;  %p763_p10 = scmp.lt.u32.totalorder %s754_s4, %s1013_s16 }
  0x39   : > { %p762_p4 = por %p761_p6, %p760_p3 }
  0x3a   : > { %p758_p13 = pneg %p757_p11 }
  0x3b   : > { %p764_p12 = por %p763_p10, %p762_p4 }
  0x3d   : > { %p765_p1 = pnand %p764_p12, %p758_p13 }
  0x3f   : > { %768 = shalt.err (!%p765_p1)
}
  0x40   : > { %s769_s25 = scalar_lea.vmem %s167_s19, 128  ;;  %s873_s3 = smov [#allocation6]  }
  0x41   : > { %p770_p2 = scmp.ne.s32.totalorder %s167_s19, %s769_s25  ;;  %s774_s7 = sshll.u32 %s873_s3, 4  ;;  %s775_s7 = int_to_ptr.vmem [resolvable:$false] %s774_s7 }
  0x42   : > { %s776_s8 = scalar_lea.vmem %s775_s7, 256  ;;  %p777_p8 = scmp.lt.s32.totalorder %s167_s19, %s775_s7 }
  0x43   : > { %p772_p9 = pnand %p770_p2, %p726_p5  ;;  %p778_p7 = scmp.lt.s32.totalorder %s776_s8, %s769_s25 }
  0x45   : > { %p773_p11 = pneg %p772_p9  ;;  %p779_p3 = por %p778_p7, %p777_p8 }
  0x47   : > { %p780_p6 = pnand %p779_p3, %p773_p11 }
  0x49   : > { %783 = shalt.err (!%p780_p6)
}
  0x4a   : > { %661 = dma.hbm_to_vmem [thread:$0]  (!%p968_p0), %s1013_s16, 128, %s167_s19, %s153_s30  }
  0x4b   : > { %p1156_p13 = scmp.ne.s32.totalorder %s1155_s29, 0 }
  0x4c   : > { %s1038_s15 = sand.u32 (!%p1156_p13), 1, %s854_s10   ;;  %p1157_p5 = scmp.ne.s32.totalorder (!%p1156_p13), %s1149_s21, 0 }
  0x4d   : > { %175 = sbr.rel (%p1156_p13) target bundleno = 901 (0x385), region = 28  ;;  %s573_s18 = sshll.u32 (!%p1156_p13), %s1038_s15, 4 }
  0x4e   : > { %s178_s4 = scalar_lea.sflag (!%p1156_p13), [#allocation4], %s1038_s15  ;;  %s181_s6 = scalar_lea.vmem (!%p1156_p13), [#allocation3], %s573_s18 }
  0x54   : > { %837 = dma.done.wait (%p1157_p5), %s178_s4, 256  }
  0x55   : > { %839 = vsyncadd (%p1157_p5), %s178_s4, 4294967040  ;;  %s574_s5 = sshll.u32 %s1038_s15, 3  ;;  %s187_s29 = scalar_lea.sflag [#allocation7], %s1038_s15 }
  0x56   : > { %s190_s16 = scalar_lea.vmem [#allocation6], %s574_s5 }
  0x57   : > { %841 = dma.done.wait (%p1157_p5), %s187_s29, 128  }
  0x58   : > { %843 = vsyncadd (%p1157_p5), %s187_s29, 4294967168  ;;  %v220_v0 = vld [vmem:[%s181_s6] sm:$0xff]  ;;  %v221_v1 = vld [vmem:[%s181_s6 + $0x8] sm:$0xff]  ;;  %vm301_vm0 = vcmask 64512   ;;  %s575_s21 = sshll.u32 %s1038_s15, 2  ;;  %s577_s19 = sshll.u32 %s862_s12, 6 }
  0x59   : > { %v222_v2 = vmax.f32 %v220_v0, %v221_v1  ;;  %v1054_v17 = vld [vmem:[%s190_s16] sm:$0xff]  ;;  %s215_s30 = scalar_lea.vmem [#allocation8], %s575_s21  ;;  %vm440_vm1 = vcmask 60416   ;;  %s1094_s28 = scalar_lea.hbm %s1145_s2, %s577_s19 }
  0x5a   : > { %v368_v18 = vcombine.high %v1054_v17, %v1054_v17  ;;  %s457_s20 = sshll.u32 %s215_s30, 4  ;;  %s443_s25 = scalar_lea.sflag [#allocation5], %s1038_s15  ;;  %s1096_s20 = int_to_ptr.vmem [resolvable:$true] %s457_s20 }
  0x5b   : > { %223 = vmax.xlane.f32.xlu0 %v222_v2  ;;  %s784_s3 = scalar_lea.vmem %s1096_s20, 64  ;;  %p1158_p0 = scmp.ne.s32.totalorder %s1150_s22, 0 }
  0x5c   : > { %434 = vmatprep.mubr.f32.mxu0 %v368_v18  ;;  %p785_p8 = scmp.ne.s32.totalorder %s1096_s20, %s784_s3  ;;  %s874_s12 = smov [#allocation8]  }
  0x5d   : > { %s788_s7 = sshll.u32 %s874_s12, 4  ;;  %s789_s7 = int_to_ptr.vmem [resolvable:$false] %s788_s7 }
  0x5e   : > { %p786_p7 = pnand %p785_p8, %p1158_p0  ;;  %s790_s8 = scalar_lea.vmem %s789_s7, 128 }
  0x5f   : > { %p791_p10 = scmp.lt.s32.totalorder %s1096_s20, %s789_s7  ;;  %p792_p12 = scmp.lt.s32.totalorder %s790_s8, %s784_s3 }
  0x60   : > { %p787_p4 = pneg %p786_p7 }
  0x61   : > { %p793_p1 = por %p792_p12, %p791_p10 }
  0x63   : > { %p794_p2 = pnand %p793_p1, %p787_p4 }
  0xe8   : > { %v224_v3 = vpop.xlane.xlu0 %223 }
  0xe9   : > { %v225_v4 = vsub.f32 %v220_v0, %v224_v3  ;;  %v226_v5 = vsub.f32 %v221_v1, %v224_v3 }
  0xeb   : > { %v227_v6 = vmul.f32 1.442695, %v225_v4  ;;  %v229_v7 = vmul.f32 1.442695, %v226_v5 }
  0xed   : > { %718 = vpow2.f32 %v227_v6 }
  0xee   : > { %720 = vpow2.f32 %v229_v7 }
  0xf7   : > { %v719_v8 = vpop.eup %718 }
  0xf8   : > { %v721_v9 = vpop.eup %720 }
  0xf9   : > { %v231_v10 = vadd.f32 %v721_v9, %v719_v8 }
  0xfb   : > { %232 = vadd.xlane.f32.xlu0 %v231_v10 }
 0x188   : > { %v233_v11 = vpop.xlane.xlu0 %232 }
 0x189   : > { %722 = vrcp.f32 %v233_v11 }
 0x193   : > { %v723_v12 = vpop.eup %722 }
 0x194   : > { %v236_v13 = vmul.f32 %v723_v12, %v721_v9  ;;  %v235_v14 = vmul.f32 %v723_v12, %v719_v8 }
 0x196   : > { %269 = vxpose.xlu1.b32.start.end [1/1] (short) %v236_v13, 128 }
 0x1d3   : > { %237 = vxpose.xlu1.b32.start.end [1/1] (short) %v235_v14, 128 }
 0x216   : > { %v285_v15 = vpop.trf.xlu1 }
 0x217   : > { %318 = vst.msk [vmem:[#allocation2 + $0x80] sm:$0xff] %vm301_vm0, %v285_v15 }
 0x21a   : > { %v286_v16 = vpop.trf.xlu1 }
 0x21b   : > { %319 = vst.msk [vmem:[#allocation2 + $0x88] sm:$0xff] %vm301_vm0, %v286_v16 }
 0x21e   : > { %v287_v19 = vpop.trf.xlu1  ;;  %v351_v21 = vld [vmem:[#allocation2 + $0x80] sm:$0xff] }
 0x21f   : > { %320 = vst.msk [vmem:[#allocation2 + $0x90] sm:$0xff] %vm301_vm0, %v287_v19 }
 0x222   : > { %v288_v20 = vpop.trf.xlu1  ;;  %v352_v22 = vld [vmem:[#allocation2 + $0x88] sm:$0xff] }
 0x223   : > { %321 = vst.msk [vmem:[#allocation2 + $0x98] sm:$0xff] %vm301_vm0, %v288_v20  ;;  %v617_v23 = vpack.c.bf16 %v352_v22, %v351_v21 }
 0x225   : > { %618 = vmatprep.subr.bf16.mxu0 %v617_v23 }
 0x226   : > { %v289_v24 = vpop.trf.xlu1  ;;  %v353_v44 = vld [vmem:[#allocation2 + $0x90] sm:$0xff] }
 0x227   : > { %322 = vst.msk [vmem:[#allocation2 + $0xa0] sm:$0xff] %vm301_vm0, %v289_v24 }
 0x22a   : > { %v290_v25 = vpop.trf.xlu1  ;;  %v354_v39 = vld [vmem:[#allocation2 + $0x98] sm:$0xff] }
 0x22b   : > { %323 = vst.msk [vmem:[#allocation2 + $0xa8] sm:$0xff] %vm301_vm0, %v290_v25  ;;  %v621_v45 = vpack.c.bf16 %v354_v39, %v353_v44 }
 0x22e   : > { %v291_v26 = vpop.trf.xlu1  ;;  %v355_v52 = vld [vmem:[#allocation2 + $0xa0] sm:$0xff] }
 0x22f   : > { %324 = vst.msk [vmem:[#allocation2 + $0xb0] sm:$0xff] %vm301_vm0, %v291_v26 }
 0x232   : > { %v292_v27 = vpop.trf.xlu1  ;;  %v356_v47 = vld [vmem:[#allocation2 + $0xa8] sm:$0xff] }
 0x233   : > { %325 = vst.msk [vmem:[#allocation2 + $0xb8] sm:$0xff] %vm301_vm0, %v292_v27  ;;  %v625_v53 = vpack.c.bf16 %v356_v47, %v355_v52 }
 0x236   : > { %v293_v28 = vpop.trf.xlu1  ;;  %v357_v60 = vld [vmem:[#allocation2 + $0xb0] sm:$0xff] }
 0x237   : > { %326 = vst.msk [vmem:[#allocation2 + $0xc0] sm:$0xff] %vm301_vm0, %v293_v28 }
 0x23a   : > { %v294_v29 = vpop.trf.xlu1  ;;  %v358_v55 = vld [vmem:[#allocation2 + $0xb8] sm:$0xff] }
 0x23b   : > { %327 = vst.msk [vmem:[#allocation2 + $0xc8] sm:$0xff] %vm301_vm0, %v294_v29  ;;  %v629_v61 = vpack.c.bf16 %v358_v55, %v357_v60 }
 0x23e   : > { %v295_v30 = vpop.trf.xlu1  ;;  %v359_v4 = vld [vmem:[#allocation2 + $0xc0] sm:$0xff] }
 0x23f   : > { %328 = vst.msk [vmem:[#allocation2 + $0xd0] sm:$0xff] %vm301_vm0, %v295_v30 }
 0x242   : > { %v296_v31 = vpop.trf.xlu1  ;;  %v360_v63 = vld [vmem:[#allocation2 + $0xc8] sm:$0xff] }
 0x243   : > { %329 = vst.msk [vmem:[#allocation2 + $0xd8] sm:$0xff] %vm301_vm0, %v296_v31  ;;  %v633_v5 = vpack.c.bf16 %v360_v63, %v359_v4 }
 0x246   : > { %v297_v32 = vpop.trf.xlu1  ;;  %v361_v12 = vld [vmem:[#allocation2 + $0xd0] sm:$0xff] }
 0x247   : > { %330 = vst.msk [vmem:[#allocation2 + $0xe0] sm:$0xff] %vm301_vm0, %v297_v32 }
 0x24a   : > { %v298_v33 = vpop.trf.xlu1  ;;  %v362_v7 = vld [vmem:[#allocation2 + $0xd8] sm:$0xff] }
 0x24b   : > { %331 = vst.msk [vmem:[#allocation2 + $0xe8] sm:$0xff] %vm301_vm0, %v298_v33  ;;  %v637_v13 = vpack.c.bf16 %v362_v7, %v361_v12 }
 0x24e   : > { %v299_v34 = vpop.trf.xlu1  ;;  %v363_v21 = vld [vmem:[#allocation2 + $0xe0] sm:$0xff] }
 0x24f   : > { %332 = vst.msk [vmem:[#allocation2 + $0xf0] sm:$0xff] %vm301_vm0, %v299_v34 }
 0x252   : > { %v300_v35 = vpop.trf.xlu1  ;;  %v364_v15 = vld [vmem:[#allocation2 + $0xe8] sm:$0xff] }
 0x253   : > { %333 = vst.msk [vmem:[#allocation2 + $0xf8] sm:$0xff] %vm301_vm0, %v300_v35  ;;  %v641_v22 = vpack.c.bf16 %v364_v15, %v363_v21 }
 0x256   : > { %v253_v36 = vpop.trf.xlu1  ;;  %v365_v29 = vld [vmem:[#allocation2 + $0xf0] sm:$0xff] }
 0x257   : > { %302 = vst.msk [vmem:[#allocation2] sm:$0xff] %vm301_vm0, %v253_v36 }
 0x25a   : > { %v254_v37 = vpop.trf.xlu1  ;;  %v366_v24 = vld [vmem:[#allocation2 + $0xf8] sm:$0xff] }
 0x25b   : > { %303 = vst.msk [vmem:[#allocation2 + $0x8] sm:$0xff] %vm301_vm0, %v254_v37  ;;  %v645_v30 = vpack.c.bf16 %v366_v24, %v365_v29 }
 0x25e   : > { %v255_v38 = vpop.trf.xlu1  ;;  %v335_v41 = vld [vmem:[#allocation2] sm:$0xff] }
 0x25f   : > { %304 = vst.msk [vmem:[#allocation2 + $0x10] sm:$0xff] %vm301_vm0, %v255_v38 }
 0x262   : > { %v256_v40 = vpop.trf.xlu1  ;;  %v336_v42 = vld [vmem:[#allocation2 + $0x8] sm:$0xff] }
 0x263   : > { %305 = vst.msk [vmem:[#allocation2 + $0x18] sm:$0xff] %vm301_vm0, %v256_v40  ;;  %v619_v43 = vpack.c.bf16 %v336_v42, %v335_v41 }
 0x265   : > { %620 = vmatpush3.bf16.msra.mxu0 %v619_v43 }
 0x266   : > { %622 = vmatprep.subr.bf16.mxu0 %v621_v45  ;;  %v257_v46 = vpop.trf.xlu1  ;;  %v337_v49 = vld [vmem:[#allocation2 + $0x10] sm:$0xff] }
 0x267   : > { %306 = vst.msk [vmem:[#allocation2 + $0x20] sm:$0xff] %vm301_vm0, %v257_v46 }
 0x26a   : > { %v258_v48 = vpop.trf.xlu1  ;;  %v338_v50 = vld [vmem:[#allocation2 + $0x18] sm:$0xff] }
 0x26b   : > { %307 = vst.msk [vmem:[#allocation2 + $0x28] sm:$0xff] %vm301_vm0, %v258_v48  ;;  %v623_v51 = vpack.c.bf16 %v338_v50, %v337_v49 }
 0x26d   : > { %624 = vmatpush3.bf16.msra.mxu0 %v623_v51 }
 0x26e   : > { %626 = vmatprep.subr.bf16.mxu0 %v625_v53  ;;  %v259_v54 = vpop.trf.xlu1  ;;  %v339_v57 = vld [vmem:[#allocation2 + $0x20] sm:$0xff] }
 0x26f   : > { %308 = vst.msk [vmem:[#allocation2 + $0x30] sm:$0xff] %vm301_vm0, %v259_v54 }
 0x272   : > { %v260_v56 = vpop.trf.xlu1  ;;  %v340_v58 = vld [vmem:[#allocation2 + $0x28] sm:$0xff] }
 0x273   : > { %309 = vst.msk [vmem:[#allocation2 + $0x38] sm:$0xff] %vm301_vm0, %v260_v56  ;;  %v627_v59 = vpack.c.bf16 %v340_v58, %v339_v57 }
 0x275   : > { %628 = vmatpush3.bf16.msra.mxu0 %v627_v59 }
 0x276   : > { %630 = vmatprep.subr.bf16.mxu0 %v629_v61  ;;  %v261_v62 = vpop.trf.xlu1  ;;  %v341_v1 = vld [vmem:[#allocation2 + $0x30] sm:$0xff] }
 0x277   : > { %310 = vst.msk [vmem:[#allocation2 + $0x40] sm:$0xff] %vm301_vm0, %v261_v62 }
 0x27a   : > { %v262_v0 = vpop.trf.xlu1  ;;  %v342_v2 = vld [vmem:[#allocation2 + $0x38] sm:$0xff] }
 0x27b   : > { %311 = vst.msk [vmem:[#allocation2 + $0x48] sm:$0xff] %vm301_vm0, %v262_v0  ;;  %v631_v3 = vpack.c.bf16 %v342_v2, %v341_v1 }
 0x27d   : > { %632 = vmatpush3.bf16.msra.mxu0 %v631_v3 }
 0x27e   : > { %634 = vmatprep.subr.bf16.mxu0 %v633_v5  ;;  %v263_v6 = vpop.trf.xlu1  ;;  %v343_v9 = vld [vmem:[#allocation2 + $0x40] sm:$0xff] }
 0x27f   : > { %312 = vst.msk [vmem:[#allocation2 + $0x50] sm:$0xff] %vm301_vm0, %v263_v6 }
 0x282   : > { %v264_v8 = vpop.trf.xlu1  ;;  %v344_v10 = vld [vmem:[#allocation2 + $0x48] sm:$0xff] }
 0x283   : > { %313 = vst.msk [vmem:[#allocation2 + $0x58] sm:$0xff] %vm301_vm0, %v264_v8  ;;  %v635_v11 = vpack.c.bf16 %v344_v10, %v343_v9 }
 0x285   : > { %636 = vmatpush3.bf16.msra.mxu0 %v635_v11 }
 0x286   : > { %638 = vmatprep.subr.bf16.mxu0 %v637_v13  ;;  %v265_v14 = vpop.trf.xlu1  ;;  %v345_v18 = vld [vmem:[#allocation2 + $0x50] sm:$0xff] }
 0x287   : > { %314 = vst.msk [vmem:[#allocation2 + $0x60] sm:$0xff] %vm301_vm0, %v265_v14 }
 0x28a   : > { %v266_v16 = vpop.trf.xlu1  ;;  %v346_v19 = vld [vmem:[#allocation2 + $0x58] sm:$0xff] }
 0x28b   : > { %315 = vst.msk [vmem:[#allocation2 + $0x68] sm:$0xff] %vm301_vm0, %v266_v16  ;;  %v639_v20 = vpack.c.bf16 %v346_v19, %v345_v18 }
 0x28d   : > { %640 = vmatpush3.bf16.msra.mxu0 %v639_v20 }
 0x28e   : > { %642 = vmatprep.subr.bf16.mxu0 %v641_v22  ;;  %v267_v23 = vpop.trf.xlu1  ;;  %v347_v26 = vld [vmem:[#allocation2 + $0x60] sm:$0xff] }
 0x28f   : > { %316 = vst.msk [vmem:[#allocation2 + $0x70] sm:$0xff] %vm301_vm0, %v267_v23 }
 0x292   : > { %v268_v25 = vpop.trf.xlu1  ;;  %v348_v27 = vld [vmem:[#allocation2 + $0x68] sm:$0xff] }
 0x293   : > { %317 = vst.msk [vmem:[#allocation2 + $0x78] sm:$0xff] %vm301_vm0, %v268_v25  ;;  %v643_v28 = vpack.c.bf16 %v348_v27, %v347_v26 }
 0x295   : > { %644 = vmatpush3.bf16.msra.mxu0 %v643_v28 }
 0x296   : > { %646 = vmatprep.subr.bf16.mxu0 %v645_v30  ;;  %v349_v31 = vld [vmem:[#allocation2 + $0x70] sm:$0xff] }
 0x29a   : > { %v350_v32 = vld [vmem:[#allocation2 + $0x78] sm:$0xff] }
 0x29b   : > { %v647_v33 = vpack.c.bf16 %v350_v32, %v349_v31 }
 0x29d   : > { %648 = vmatpush3.bf16.msra.mxu0 %v647_v33 }
 0x2a0   : > { %435 = vmatmul.mubr.f32.vlgmr.msra.gmra.mrb[0].mxu0 %v1054_v17 }
 0x373   : > { %v614_v34 = vpop.f32.mrb[0].mxu0 }
 0x374   : > { %v615_v35 = vpop.f32.mrb[1].mxu0 }
 0x375   : > { %v616_v36 = vadd.f32 %v615_v35, %v614_v34 }
 0x377   : > { %441 = vst.msk [vmem:[%s215_s30] sm:$0xf] %vm440_vm1, %v616_v36 }
 0x378   : > { %797 = shalt.err (!%p794_p2)
}
 0x379   : > { %s798_s15 = scalar_lea.hbm %s1094_s28, 64  ;;  %s802_s6 = scalar_lea.hbm %s1145_s2, 128 }
 0x37a   : > { %p799_p9 = scmp.ne.s32.totalorder %s1094_s28, %s798_s15  ;;  %p803_p6 = scmp.lt.u32.totalorder %s1094_s28, %s1145_s2 }
 0x37b   : > { %p804_p13 = scmp.lt.u32.totalorder %s802_s6, %s798_s15  ;;  %p806_p8 = scmp.lt.u32.totalorder %s798_s15, %s1094_s28 }
 0x37c   : > { %p800_p11 = pnand %p799_p9, %p1158_p0 }
 0x37d   : > { %p805_p5 = por %p804_p13, %p803_p6 }
 0x37e   : > { %p801_p3 = pneg %p800_p11 }
 0x37f   : > { %p807_p7 = por %p806_p8, %p805_p5 }
 0x381   : > { %p808_p4 = pnand %p807_p7, %p801_p3 }
 0x383   : > { %811 = shalt.err (!%p808_p4)
}
 0x384   : > { %653 = dma.vmem_to_hbm [thread:$0]  (%p1158_p0), %s1096_s20, 64, %s1094_s28, %s443_s25  }
 0x385 PF: > { %s469_s16 = sand.u32 1, %s850_s9   ;;  %p1159_p10 = scmp.ne.s32.totalorder %s1151_s24, 0 }
 0x386   : > { %p1160_p12 = scmp.ge.s32.totalorder %s870_s14, 2  ;;  %s470_s21 = scalar_lea.sflag [#allocation5], %s469_s16 }
 0x388   : > { %p663_p1 = pnand %p1160_p12, %p1159_p10 }
 0x38a   : > { %845 = dma.done.wait (!%p663_p1), %s470_s21, 64  }
 0x38b   : > { %847 = vsyncadd (!%p663_p1), %s470_s21, 4294967232  ;;  %s21_s14 = sadd.s32 1, %s870_s14   ;;  %s1161_s9 = smov %s854_s10 }
 0x38c   : > { %p18_p2 = scmp.ge.s32.totalorder %s21_s14, 4   ;;  %s1162_s10 = smov %s858_s11 }
 0x38d   : > { %s1163_s11 = smov %s946_s23  ;;  %s1164_s12 = smov %s866_s13 }
 0x38e   : > { %s1165_s13 = smov %s1167_s17  ;;  %20 = sbr.rel (!%p18_p2) target bundleno = 8 (0x8), region = 90 }
 0x395   :  { %475 = vsyncpa [#allocation4], 1 }
 0x396   :  { %477 = vsyncpa [#allocation4 + $0x1], 1 }
 0x397   :  { %478 = vsyncpa [#allocation7], 1 }
 0x398   :  { %480 = vsyncpa [#allocation7 + $0x1], 1 }
 0x399   :  { %481 = vsyncpa [#allocation5], 1 }
 0x39a   :  { %483 = vsyncpa [#allocation5 + $0x1], 1 }

</bundles_post_ra>
